<compile_context>
chip_gen: v6e
topology: v6e:2x2x1
jax: 0.10.0
libtpu: 0.0.40
codegen_flags: <defaults>
</compile_context>

<pallas_src>
import math

import jax
import jax.numpy as jnp
from jax.experimental import pallas as pl
from jax.experimental.pallas import tpu as pltpu

BN_EPS = 1e-5
DEFAULT_TILE_B = 8192                 # bf16 operands keep this inside v7x's 64 MiB VMEM
VMEM_LIMIT_BYTES = 64 * 1024 * 1024   # raise scoped limit (v5e default 16 MiB, v6e/v7x 32 MiB)


def _round_up(n, m):
    return ((n + m - 1) // m) * m


# ---------------------------------------------------------------------------
# Kernel: one (TILE_B, 16) batch tile -> (TILE_B, 1) probabilities.
# ---------------------------------------------------------------------------
def diabetes_kernel(x_ref, w1_ref, b1_ref, w2_ref, b2_ref, w3_ref, b3_ref, o_ref):
    x = x_ref[...].astype(jnp.float32)                      # (TILE_B, 16)

    # ---- preprocess (data-dependent part only; constant scalings on cols
    # 12/13/15 are pre-folded into w1). Pure VPU work, hides under the MXU. ---
    col = jax.lax.broadcasted_iota(jnp.int32, (1, 16), 1)   # (1, 16) column ids
    c6 = x[:, 6:7]                                          # (TILE_B, 1)
    new7 = jnp.where(c6 == 0.0, 1.0, 0.0)                   # col7; col8 = 1-new7; col9 = new7
    x = jnp.where(col == 3, jnp.minimum(x * (1.0 / 60.0), 1.0), x)
    x = jnp.where((col == 7) | (col == 9), new7, x)
    x = jnp.where(col == 8, 1.0 - new7, x)

    # ---- fc1 -> relu (dropout=identity; BN1 folded into fc2) ---------------
    h1 = jnp.dot(x.astype(jnp.bfloat16), w1_ref[...],
                 preferred_element_type=jnp.float32) + b1_ref[...]
    h1 = jnp.maximum(h1, 0.0)                               # (TILE_B, 64) f32

    # ---- (BN1-folded) fc2 -> relu (dropout=identity; BN2 folded into fc3) --
    h2 = jnp.dot(h1.astype(jnp.bfloat16), w2_ref[...],
                 preferred_element_type=jnp.float32) + b2_ref[...]
    h2 = jnp.maximum(h2, 0.0)                               # (TILE_B, 128) f32

    # ---- (BN2-folded) fc3 -> sigmoid; canonical (tile,128) x (128,1) matmul -
    logits = jnp.dot(h2.astype(jnp.bfloat16), w3_ref[...],
                     preferred_element_type=jnp.float32) + b3_ref[...]
    o_ref[...] = jax.nn.sigmoid(logits)                     # (TILE_B, 1)


# ---------------------------------------------------------------------------
# Parameter construction / folding (pure JAX, done once outside the kernel).
# ---------------------------------------------------------------------------
def init_params(key):
    """Deterministic PyTorch-style (Kaiming-uniform) Linear init + fresh BN stats."""

    def linear(k, fan_in, fan_out):
        kw, kb = jax.random.split(k)
        bound = 1.0 / math.sqrt(fan_in)
        w = jax.random.uniform(kw, (fan_in, fan_out), jnp.float32, -bound, bound)
        b = jax.random.uniform(kb, (1, fan_out), jnp.float32, -bound, bound)
        return w, b

    def batchnorm(n):
        return (
            jnp.ones((1, n), jnp.float32),   # gamma
            jnp.zeros((1, n), jnp.float32),  # beta
            jnp.zeros((1, n), jnp.float32),  # running_mean
            jnp.ones((1, n), jnp.float32),   # running_var
        )

    k1, k2, k3 = jax.random.split(key, 3)
    w1, b1 = linear(k1, 16, 64)
    w2, b2 = linear(k2, 64, 128)
    w3, b3 = linear(k3, 128, 1)
    g1, bt1, rm1, rv1 = batchnorm(64)
    g2, bt2, rm2, rv2 = batchnorm(128)
    return (w1, b1, g1, bt1, rm1, rv1,
            w2, b2, g2, bt2, rm2, rv2,
            w3, b3)


def fold_params(params):
    """Fold eval-mode BN affines + constant preprocess scalings; pre-cast weights to bf16."""
    (w1, b1, g1, bt1, rm1, rv1,
     w2, b2, g2, bt2, rm2, rv2,
     w3, b3) = params

    # Constant per-column scalings from preprocess() folded into fc1 rows.
    scale_in = (jnp.ones((16,), jnp.float32)
                .at[12].set(1.0 / 5.0)
                .at[13].set(1.0 / 30.0)
                .at[15].set(1.0 / 13.0))
    w1f = (w1 * scale_in[:, None]).astype(jnp.bfloat16)   # (16, 64) bf16
    b1f = b1                                              # (1, 64) f32

    # BN1 (after relu1) folded into fc2:  bn1(h) = s1*h + c1
    s1 = g1 * jax.lax.rsqrt(rv1 + BN_EPS)                 # (1, 64)
    c1 = bt1 - rm1 * s1                                   # (1, 64)
    w2f = (w2 * s1[0][:, None]).astype(jnp.bfloat16)      # (64, 128) bf16
    b2f = c1 @ w2 + b2                                    # (1, 128) f32

    # BN2 (after relu2) folded into fc3.
    s2 = g2 * jax.lax.rsqrt(rv2 + BN_EPS)                 # (1, 128)
    c2 = bt2 - rm2 * s2                                   # (1, 128)
    w3c = (w3 * s2[0][:, None]).astype(jnp.bfloat16)      # (128, 1) bf16 (column form)
    b3f = c2 @ w3 + b3                                    # (1, 1) f32

    return (w1f, b1f, w2f, b2f, w3c, b3f)


# ---------------------------------------------------------------------------
# Wrapper
# ---------------------------------------------------------------------------
def diabetes_predictor(x, folded_params, tile_b=DEFAULT_TILE_B):
    """x: (B, 16) float32 -> (B,) float32 probabilities."""
    w1f, b1f, w2f, b2f, w3c, b3f = folded_params
    B = x.shape[0]

    b_min = _round_up(B, 128)
    if b_min <= 128:
        tile, b_pad = 128, 128                      # a single grid step is unavoidable
    elif b_min <= 2 * tile_b:
        tile = _round_up(b_min // 2, 128)           # split into 2 tiles -> both v7x TCs busy
        b_pad = 2 * tile
    else:
        tile = tile_b
        b_pad = _round_up(B, tile)

    if b_pad != B:
        x = jnp.pad(x, ((0, b_pad - B), (0, 0)))

    grid = (b_pad // tile,)
    const = lambda i: (0, 0)

    flops = 2 * b_pad * (16 * 64 + 64 * 128 + 128 * 1)
    bytes_accessed = b_pad * (16 * 4 + 4)           # ~68 B/row in+out

    out = pl.pallas_call(
        diabetes_kernel,
        out_shape=jax.ShapeDtypeStruct((b_pad, 1), jnp.float32),
        grid=grid,
        in_specs=[
            pl.BlockSpec((tile, 16), lambda i: (i, 0)),   # x: tiled over batch
            pl.BlockSpec((16, 64), const),                # w1 bf16 (VMEM-resident)
            pl.BlockSpec((1, 64), const),                 # b1
            pl.BlockSpec((64, 128), const),               # w2 bf16 (BN1-folded)
            pl.BlockSpec((1, 128), const),                # b2 (BN1-folded)
            pl.BlockSpec((128, 1), const),                # w3 column bf16 (BN2-folded)
            pl.BlockSpec((1, 1), const),                  # b3 (BN2-folded)
        ],
        out_specs=pl.BlockSpec((tile, 1), lambda i: (i, 0)),
        compiler_params=pltpu.CompilerParams(
            dimension_semantics=("parallel",),
            vmem_limit_bytes=VMEM_LIMIT_BYTES),
        cost_estimate=pl.CostEstimate(
            flops=flops, transcendentals=b_pad, bytes_accessed=bytes_accessed),
    )(x, w1f, b1f, w2f, b2f, w3c, b3f)

    return out[:B, 0]   # matches x.squeeze() for B > 1


# ---------------------------------------------------------------------------
# Pure-JAX f32 reference (unfolded params) for a sanity check.
# ---------------------------------------------------------------------------
def reference_forward(x, params):
    (w1, b1, g1, bt1, rm1, rv1,
     w2, b2, g2, bt2, rm2, rv2,
     w3, b3) = params
    xp = x.astype(jnp.float32)
    xp = xp.at[:, 3].set(jnp.where(xp[:, 3] < 60.0, xp[:, 3] / 60.0, 1.0))
    new7 = jnp.where(xp[:, 6] == 0.0, 1.0, 0.0)
    xp = xp.at[:, 7].set(new7)
    xp = xp.at[:, 8].set(1.0 - new7)
    xp = xp.at[:, 9].set(new7)
    xp = xp.at[:, 12].set(xp[:, 12] / 5.0)
    xp = xp.at[:, 13].set(xp[:, 13] / 30.0)
    xp = xp.at[:, 15].set(xp[:, 15] / 13.0)

    h1 = jnp.maximum(xp @ w1 + b1, 0.0)
    h1 = (h1 - rm1) * jax.lax.rsqrt(rv1 + BN_EPS) * g1 + bt1
    h2 = jnp.maximum(h1 @ w2 + b2, 0.0)
    h2 = (h2 - rm2) * jax.lax.rsqrt(rv2 + BN_EPS) * g2 + bt2
    return jax.nn.sigmoid(h2 @ w3 + b3)[:, 0]


if __name__ == "__main__":
    key = jax.random.PRNGKey(0)
    k_params, k_x = jax.random.split(key)

    params = init_params(k_params)
    folded = fold_params(params)

    def make_batch(k, B):
        x = jax.random.uniform(k, (B, 16), jnp.float32, 0.0, 2.0)
        # col 3 looks like "minutes" (0..120), col 6 is sometimes exactly 0
        x = x.at[:, 3].set(jax.random.uniform(k, (B,), jnp.float32, 0.0, 120.0))
        x = x.at[:, 6].set(jnp.where(jnp.arange(B) % 2 == 0, 0.0, 1.0))
        return x

    for B in (8, 384):   # B=384 exercises the 2-tile (v7x dual-TC) path + padding
        x = make_batch(jax.random.fold_in(k_x, B), B)
        out = jax.block_until_ready(diabetes_predictor(x, folded))
        ref = jax.block_until_ready(reference_forward(x, params))
        assert out.shape == (B,)
        assert bool(jnp.all(jnp.isfinite(out)))
        # bf16 matmul operands vs pure-f32 reference -> slightly looser tolerance.
        assert bool(jnp.max(jnp.abs(out - ref)) < 2e-2), (B, out, ref)

    print("KERNEL_OK")
</pallas_src>

<mosaic_0001>
module attributes {stable_mosaic.version = 11 : i64} {
  func.func @diabetes_kernel(%arg0: i32, %arg1: memref<128x16xf32, #tpu.memory_space<vmem>>, %arg2: memref<16x64xbf16, #tpu.memory_space<vmem>>, %arg3: memref<1x64xf32, #tpu.memory_space<vmem>>, %arg4: memref<64x128xbf16, #tpu.memory_space<vmem>>, %arg5: memref<1x128xf32, #tpu.memory_space<vmem>>, %arg6: memref<128x1xbf16, #tpu.memory_space<vmem>>, %arg7: memref<1x1xf32, #tpu.memory_space<vmem>>, %arg8: memref<128x1xf32, #tpu.memory_space<vmem>>) attributes {dimension_semantics = [#tpu.dimension_semantics<parallel>], iteration_bounds = array<i64: 1>, scalar_prefetch = 0 : i64, scratch_operands = 0 : i64, tpu.core_type = #tpu.core_type<tc>, window_params = [{transform_indices = @transform_0, window_bounds = array<i64: 128, 16>}, {pipeline_mode = #tpu.pipeline_mode<synchronous>, transform_indices = @transform_1, window_bounds = array<i64: 16, 64>}, {pipeline_mode = #tpu.pipeline_mode<synchronous>, transform_indices = @transform_2, window_bounds = array<i64: 1, 64>}, {pipeline_mode = #tpu.pipeline_mode<synchronous>, transform_indices = @transform_3, window_bounds = array<i64: 64, 128>}, {pipeline_mode = #tpu.pipeline_mode<synchronous>, transform_indices = @transform_4, window_bounds = array<i64: 1, 128>}, {pipeline_mode = #tpu.pipeline_mode<synchronous>, transform_indices = @transform_5, window_bounds = array<i64: 128, 1>}, {pipeline_mode = #tpu.pipeline_mode<synchronous>, transform_indices = @transform_6, window_bounds = array<i64: 1, 1>}, {transform_indices = @transform_7, window_bounds = array<i64: 128, 1>}]} {
    %c0 = arith.constant 0 : index
    %c0_0 = arith.constant 0 : index
    %0 = vector.load %arg1[%c0, %c0_0] : memref<128x16xf32, #tpu.memory_space<vmem>>, vector<128x16xf32>
    %1 = tpu.iota {dimensions = array<i32: 1>} : vector<1x16xi32>
    %2 = vector.extract_strided_slice %0 {offsets = [0, 6], sizes = [128, 1], strides = [1, 1]} : vector<128x16xf32> to vector<128x1xf32>
    %cst = arith.constant 0.000000e+00 : f32
    %3 = vector.broadcast %cst : f32 to vector<128x1xf32>
    %4 = arith.cmpf oeq, %2, %3 : vector<128x1xf32>
    %cst_1 = arith.constant 1.000000e+00 : f32
    %cst_2 = arith.constant 0.000000e+00 : f32
    %5 = vector.broadcast %cst_1 : f32 to vector<128x1xf32>
    %6 = vector.broadcast %cst_2 : f32 to vector<128x1xf32>
    %7 = arith.select %4, %5, %6 : vector<128x1xi1>, vector<128x1xf32>
    %c3_i32 = arith.constant 3 : i32
    %8 = vector.broadcast %c3_i32 : i32 to vector<1x16xi32>
    %9 = arith.cmpi eq, %1, %8 : vector<1x16xi32>
    %cst_3 = arith.constant 0.0166666675 : f32
    %10 = vector.broadcast %cst_3 : f32 to vector<128x16xf32>
    %11 = arith.mulf %0, %10 : vector<128x16xf32>
    %cst_4 = arith.constant 1.000000e+00 : f32
    %12 = vector.broadcast %cst_4 : f32 to vector<128x16xf32>
    %13 = arith.minimumf %11, %12 : vector<128x16xf32>
    %14 = vector.shape_cast %9 : vector<1x16xi1> to vector<1x16xi1>
    %15 = vector.broadcast %14 : vector<1x16xi1> to vector<128x16xi1>
    %16 = arith.select %15, %13, %0 : vector<128x16xi1>, vector<128x16xf32>
    %c7_i32 = arith.constant 7 : i32
    %17 = vector.broadcast %c7_i32 : i32 to vector<1x16xi32>
    %18 = arith.cmpi eq, %1, %17 : vector<1x16xi32>
    %c9_i32 = arith.constant 9 : i32
    %19 = vector.broadcast %c9_i32 : i32 to vector<1x16xi32>
    %20 = arith.cmpi eq, %1, %19 : vector<1x16xi32>
    %21 = arith.ori %18, %20 : vector<1x16xi1>
    %22 = vector.shape_cast %21 : vector<1x16xi1> to vector<1x16xi1>
    %23 = vector.broadcast %22 : vector<1x16xi1> to vector<128x16xi1>
    %24 = vector.shape_cast %7 : vector<128x1xf32> to vector<128x1xf32>
    %25 = vector.broadcast %24 : vector<128x1xf32> to vector<128x16xf32>
    %26 = arith.select %23, %25, %16 : vector<128x16xi1>, vector<128x16xf32>
    %c8_i32 = arith.constant 8 : i32
    %27 = vector.broadcast %c8_i32 : i32 to vector<1x16xi32>
    %28 = arith.cmpi eq, %1, %27 : vector<1x16xi32>
    %cst_5 = arith.constant 1.000000e+00 : f32
    %29 = vector.broadcast %cst_5 : f32 to vector<128x1xf32>
    %30 = arith.subf %29, %7 : vector<128x1xf32>
    %31 = vector.shape_cast %28 : vector<1x16xi1> to vector<1x16xi1>
    %32 = vector.broadcast %31 : vector<1x16xi1> to vector<128x16xi1>
    %33 = vector.shape_cast %30 : vector<128x1xf32> to vector<128x1xf32>
    %34 = vector.broadcast %33 : vector<128x1xf32> to vector<128x16xf32>
    %35 = arith.select %32, %34, %26 : vector<128x16xi1>, vector<128x16xf32>
    %36 = arith.truncf %35 : vector<128x16xf32> to vector<128x16xbf16>
    %c0_6 = arith.constant 0 : index
    %c0_7 = arith.constant 0 : index
    %37 = vector.load %arg2[%c0_6, %c0_7] : memref<16x64xbf16, #tpu.memory_space<vmem>>, vector<16x64xbf16>
    %cst_8 = arith.constant dense<0.000000e+00> : vector<128x64xf32>
    %38 = tpu.matmul %36, %37, %cst_8 {dimension_numbers = #tpu.dot_dimension_numbers<[1], [0], [0], [1], [0, 0, 1, 1], [], []>} : vector<128x16xbf16>, vector<16x64xbf16>, vector<128x64xf32> -> vector<128x64xf32>
    %c0_9 = arith.constant 0 : index
    %c0_10 = arith.constant 0 : index
    %39 = vector.load %arg3[%c0_9, %c0_10] : memref<1x64xf32, #tpu.memory_space<vmem>>, vector<1x64xf32>
    %40 = vector.broadcast %39 : vector<1x64xf32> to vector<128x64xf32>
    %41 = arith.addf %38, %40 : vector<128x64xf32>
    %cst_11 = arith.constant 0.000000e+00 : f32
    %42 = vector.broadcast %cst_11 : f32 to vector<128x64xf32>
    %43 = arith.maximumf %41, %42 : vector<128x64xf32>
    %44 = arith.truncf %43 : vector<128x64xf32> to vector<128x64xbf16>
    %c0_12 = arith.constant 0 : index
    %c0_13 = arith.constant 0 : index
    %45 = vector.load %arg4[%c0_12, %c0_13] : memref<64x128xbf16, #tpu.memory_space<vmem>>, vector<64x128xbf16>
    %cst_14 = arith.constant dense<0.000000e+00> : vector<128x128xf32>
    %46 = tpu.matmul %44, %45, %cst_14 {dimension_numbers = #tpu.dot_dimension_numbers<[1], [0], [0], [1], [0, 0, 1, 1], [], []>} : vector<128x64xbf16>, vector<64x128xbf16>, vector<128x128xf32> -> vector<128x128xf32>
    %c0_15 = arith.constant 0 : index
    %c0_16 = arith.constant 0 : index
    %47 = vector.load %arg5[%c0_15, %c0_16] : memref<1x128xf32, #tpu.memory_space<vmem>>, vector<1x128xf32>
    %48 = vector.broadcast %47 : vector<1x128xf32> to vector<128x128xf32>
    %49 = arith.addf %46, %48 : vector<128x128xf32>
    %cst_17 = arith.constant 0.000000e+00 : f32
    %50 = vector.broadcast %cst_17 : f32 to vector<128x128xf32>
    %51 = arith.maximumf %49, %50 : vector<128x128xf32>
    %52 = arith.truncf %51 : vector<128x128xf32> to vector<128x128xbf16>
    %c0_18 = arith.constant 0 : index
    %c0_19 = arith.constant 0 : index
    %53 = vector.load %arg6[%c0_18, %c0_19] : memref<128x1xbf16, #tpu.memory_space<vmem>>, vector<128x1xbf16>
    %cst_20 = arith.constant dense<0.000000e+00> : vector<128x1xf32>
    %54 = tpu.matmul %52, %53, %cst_20 {dimension_numbers = #tpu.dot_dimension_numbers<[1], [0], [0], [1], [0, 0, 1, 1], [], []>} : vector<128x128xbf16>, vector<128x1xbf16>, vector<128x1xf32> -> vector<128x1xf32>
    %c0_21 = arith.constant 0 : index
    %c0_22 = arith.constant 0 : index
    %55 = vector.load %arg7[%c0_21, %c0_22] : memref<1x1xf32, #tpu.memory_space<vmem>>, vector<1x1xf32>
    %56 = vector.broadcast %55 : vector<1x1xf32> to vector<128x1xf32>
    %57 = arith.addf %54, %56 : vector<128x1xf32>
    %58 = arith.negf %57 : vector<128x1xf32>
    %59 = math.exp %58 : vector<128x1xf32>
    %cst_23 = arith.constant 1.000000e+00 : f32
    %60 = vector.broadcast %cst_23 : f32 to vector<128x1xf32>
    %61 = arith.addf %60, %59 : vector<128x1xf32>
    %62 = arith.divf %60, %61 : vector<128x1xf32>
    %c0_24 = arith.constant 0 : index
    %c0_25 = arith.constant 0 : index
    %63 = vector.load %arg8[%c0_24, %c0_25] : memref<128x1xf32, #tpu.memory_space<vmem>>, vector<128x1xf32>
    tpu.vector_store %arg8[%c0_24, %c0_25], %62 {strides = array<i32>} : memref<128x1xf32, #tpu.memory_space<vmem>>, vector<128x1xf32>,
    return
  }
  func.func @transform_0(%arg0: i32) -> (i32, i32) {
    %c0_i32 = arith.constant 0 : i32
    %c0_i32_0 = arith.constant 0 : i32
    return %arg0, %c0_i32 : i32, i32
  }
  func.func @transform_1(%arg0: i32) -> (i32, i32) {
    %c0_i32 = arith.constant 0 : i32
    %c0_i32_0 = arith.constant 0 : i32
    %c0_i32_1 = arith.constant 0 : i32
    return %c0_i32, %c0_i32_0 : i32, i32
  }
  func.func @transform_2(%arg0: i32) -> (i32, i32) {
    %c0_i32 = arith.constant 0 : i32
    %c0_i32_0 = arith.constant 0 : i32
    %c0_i32_1 = arith.constant 0 : i32
    return %c0_i32, %c0_i32_0 : i32, i32
  }
  func.func @transform_3(%arg0: i32) -> (i32, i32) {
    %c0_i32 = arith.constant 0 : i32
    %c0_i32_0 = arith.constant 0 : i32
    %c0_i32_1 = arith.constant 0 : i32
    return %c0_i32, %c0_i32_0 : i32, i32
  }
  func.func @transform_4(%arg0: i32) -> (i32, i32) {
    %c0_i32 = arith.constant 0 : i32
    %c0_i32_0 = arith.constant 0 : i32
    %c0_i32_1 = arith.constant 0 : i32
    return %c0_i32, %c0_i32_0 : i32, i32
  }
  func.func @transform_5(%arg0: i32) -> (i32, i32) {
    %c0_i32 = arith.constant 0 : i32
    %c0_i32_0 = arith.constant 0 : i32
    %c0_i32_1 = arith.constant 0 : i32
    return %c0_i32, %c0_i32_0 : i32, i32
  }
  func.func @transform_6(%arg0: i32) -> (i32, i32) {
    %c0_i32 = arith.constant 0 : i32
    %c0_i32_0 = arith.constant 0 : i32
    %c0_i32_1 = arith.constant 0 : i32
    return %c0_i32, %c0_i32_0 : i32, i32
  }
  func.func @transform_7(%arg0: i32) -> (i32, i32) {
    %c0_i32 = arith.constant 0 : i32
    %c0_i32_0 = arith.constant 0 : i32
    return %arg0, %c0_i32 : i32, i32
  }
}

</mosaic_0001>

<bundles_post_ra>
// kernel: tpu_custom_call.1
= control target key start
LH: loop header
LB: loop body
LE: loop exit
PB: predicated region body
PF: predicated region fallthrough
CT: control target
= control target key end

     0   :  { %v1321_v0 = vmov 6   ;;  %v1322_v4 = vmov 0.0   ;;  %s1789_s0 = inlined_call_operand.vmem [shape: f32[128,16], index: 0, kind: input, shape index: {}]   ;;  %s1790_s1 = inlined_call_operand.vmem [shape: bf16[16,64], index: 1, kind: input, shape index: {}]   ;;  %s1791_s3 = inlined_call_operand.vmem [shape: bf16[64,128], index: 3, kind: input, shape index: {}]   ;;  %s1792_s5 = inlined_call_operand.vmem [shape: bf16[128,1], index: 5, kind: input, shape index: {}]   ;;  %s1793_s2 = inlined_call_operand.vmem [shape: f32[1,64], index: 2, kind: input, shape index: {}]   ;;  %s1794_s6 = inlined_call_operand.<no memory space> [shape: f32[1,1], index: 6, kind: input, shape index: {}]   ;;  %s1795_s4 = inlined_call_operand.vmem [shape: f32[1,128], index: 4, kind: input, shape index: {}]   ;;  %s1796_s7 = inlined_call_operand.vmem [shape: f32[128,1], index: 7, kind: output, shape index: {}]  }
   0x1   :  { %1162 = vset.pattern.permute.xlu0 %v1321_v0  ;;  %v1366_v1 = vld [vmem:[%s1789_s0] sm:$0xff]  ;;  %v1371_v2 = vld [vmem:[%s1789_s0 + $0x8] sm:$0xff]  ;;  %1178 = vset.pattern.permute.xlu1 %v1321_v0  ;;  %v1376_v3 = vld [vmem:[%s1789_s0 + $0x10] sm:$0xff] }
   0x2   :  { %vm47_vm0 = vcmp.eq.f32.partialorder %v1366_v1, 0.0  ;;  %vm48_vm1 = vcmp.eq.f32.partialorder %v1371_v2, 0.0  ;;  %v1385_v7 = vld [vmem:[%s1789_s0 + $0x18] sm:$0xff]  ;;  %vm49_vm2 = vcmp.eq.f32.partialorder %v1376_v3, 0.0  ;;  %v1391_v10 = vld [vmem:[%s1789_s0 + $0x20] sm:$0xff]  ;;  %v1398_v13 = vld [vmem:[%s1789_s0 + $0x28] sm:$0xff] }
   0x3   :  { %v63_v5 = vsel %vm47_vm0, 1.0, %v1322_v4  ;;  %v64_v6 = vsel %vm48_vm1, 1.0, %v1322_v4  ;;  %vm50_vm3 = vcmp.eq.f32.partialorder %v1385_v7, 0.0  ;;  %v65_v12 = vsel %vm49_vm2, 1.0, %v1322_v4  ;;  %v1405_v16 = vld [vmem:[%s1789_s0 + $0x30] sm:$0xff]  ;;  %v1410_v17 = vld [vmem:[%s1789_s0 + $0x38] sm:$0xff] }
   0x4   :  { %v1163_v8 = vpack.i.bf16 %v64_v6, %v63_v5  ;;  %v232_v9 = vsub.f32 1.0, %v63_v5  ;;  %v233_v11 = vsub.f32 1.0, %v64_v6  ;;  %v66_v14 = vsel %vm50_vm3, 1.0, %v1322_v4  ;;  %v1420_v24 = vld [vmem:[%s1789_s0 + $0x40] sm:$0xff]  ;;  %v1426_v27 = vld [vmem:[%s1789_s0 + $0x48] sm:$0xff]  ;;  %v1435_v33 = vld [vmem:[%s1789_s0 + $0x50] sm:$0xff] }
   0x5   :  { %v234_v15 = vsub.f32 1.0, %v65_v12  ;;  %vm51_vm4 = vcmp.eq.f32.partialorder %v1391_v10, 0.0  ;;  %v1168_v19 = vpack.i.bf16 %v66_v14, %v65_v12  ;;  %v235_v20 = vsub.f32 1.0, %v66_v14  ;;  %v1244_v28 = vld [vmem:[%s1790_s1] sm:$0xff]   ;;  %v1442_v36 = vld [vmem:[%s1789_s0 + $0x58] sm:$0xff]  ;;  %v1456_v41 = vld [vmem:[%s1789_s0 + $0x68] sm:$0xff] }
   0x6   :  { %1164 = vperm.xlu0 %1162, %v1163_v8   ;;  %v1179_v18 = vpack.i.bf16 %v233_v11, %v232_v9  ;;  %vm52_vm5 = vcmp.eq.f32.partialorder %v1398_v13, 0.0  ;;  %v67_v21 = vsel %vm51_vm4, 1.0, %v1322_v4  ;;  %vm53_vm6 = vcmp.eq.f32.partialorder %v1405_v16, 0.0  ;;  %1070 = vmatprep.subr.bf16.mxu0 %v1244_v28  ;;  %v1451_v40 = vld [vmem:[%s1789_s0 + $0x60] sm:$0xff]  ;;  %v1465_v48 = vld [vmem:[%s1789_s0 + $0x70] sm:$0xff]  ;;  %v1470_v49 = vld [vmem:[%s1789_s0 + $0x78] sm:$0xff] }
   0x7   :  { %v1184_v22 = vpack.i.bf16 %v235_v20, %v234_v15  ;;  %v68_v23 = vsel %vm52_vm5, 1.0, %v1322_v4  ;;  %vm54_vm7 = vcmp.eq.f32.partialorder %v1410_v17, 0.0  ;;  %v69_v26 = vsel %vm53_vm6, 1.0, %v1322_v4  ;;  %1071 = vmatpush3.bf16.msra.mxu0 %v1244_v28  ;;  %v1245_v8 = vld [vmem:[%s1791_s3 + $0x18] sm:$0xff]  }
   0x8   :  { %1180 = vperm.xlu1 %1178, %v1179_v18   ;;  %v1173_v25 = vpack.i.bf16 %v68_v23, %v67_v21  ;;  %v70_v29 = vsel %vm54_vm7, 1.0, %v1322_v4  ;;  %v236_v30 = vsub.f32 1.0, %v67_v21  ;;  %v237_v32 = vsub.f32 1.0, %v68_v23  ;;  %1088 = vmatprep.subr.bf16.mxu1 %v1245_v8  ;;  %v1247_v23 = vld [vmem:[%s1791_s3 + $0x8] sm:$0xff]  }
   0x9   :  { %v1189_v31 = vpack.i.bf16 %v70_v29, %v69_v26  ;;  %v238_v34 = vsub.f32 1.0, %v69_v26  ;;  %v239_v35 = vsub.f32 1.0, %v70_v29  ;;  %vm55_vm8 = vcmp.eq.f32.partialorder %v1420_v24, 0.0  ;;  %1089 = vmatpush3.bf16.msra.mxu1 %v1245_v8 }
   0xa   :  { %1169 = vperm.xlu0 %1162, %v1168_v19   ;;  %vm56_vm9 = vcmp.eq.f32.partialorder %v1426_v27, 0.0  ;;  %v1194_v37 = vpack.i.bf16 %v237_v32, %v236_v30  ;;  %v71_v38 = vsel %vm55_vm8, 1.0, %v1322_v4  ;;  %vm57_vm10 = vcmp.eq.f32.partialorder %v1435_v33, 0.0 }
   0xb   :  { %v72_v39 = vsel %vm56_vm9, 1.0, %v1322_v4  ;;  %vm58_vm11 = vcmp.eq.f32.partialorder %v1442_v36, 0.0  ;;  %v1199_v42 = vpack.i.bf16 %v239_v35, %v238_v34  ;;  %v73_v44 = vsel %vm57_vm10, 1.0, %v1322_v4 }
   0xc   :  { %1185 = vperm.xlu1 %1178, %v1184_v22   ;;  %v1204_v43 = vpack.i.bf16 %v72_v39, %v71_v38  ;;  %v74_v45 = vsel %vm58_vm11, 1.0, %v1322_v4  ;;  %v240_v46 = vsub.f32 1.0, %v71_v38  ;;  %v241_v47 = vsub.f32 1.0, %v72_v39 }
   0xd   :  { %vm59_vm12 = vcmp.eq.f32.partialorder %v1451_v40, 0.0  ;;  %vm60_vm13 = vcmp.eq.f32.partialorder %v1456_v41, 0.0  ;;  %v1209_v50 = vpack.i.bf16 %v74_v45, %v73_v44  ;;  %v242_v51 = vsub.f32 1.0, %v73_v44 }
   0xe   :  { %1174 = vperm.xlu0 %1162, %v1173_v25   ;;  %v243_v52 = vsub.f32 1.0, %v74_v45  ;;  %v1214_v53 = vpack.i.bf16 %v241_v47, %v240_v46  ;;  %v75_v54 = vsel %vm59_vm12, 1.0, %v1322_v4  ;;  %v76_v55 = vsel %vm60_vm13, 1.0, %v1322_v4 }
   0xf   :  { %vm61_vm14 = vcmp.eq.f32.partialorder %v1465_v48, 0.0  ;;  %vm62_vm15 = vcmp.eq.f32.partialorder %v1470_v49, 0.0  ;;  %v1224_v57 = vpack.i.bf16 %v76_v55, %v75_v54  ;;  %v244_v60 = vsub.f32 1.0, %v75_v54 }
  0x10   :  { %1190 = vperm.xlu1 %1178, %v1189_v31   ;;  %v1219_v56 = vpack.i.bf16 %v243_v52, %v242_v51  ;;  %v77_v58 = vsel %vm61_vm14, 1.0, %v1322_v4  ;;  %v78_v59 = vsel %vm62_vm15, 1.0, %v1322_v4  ;;  %v245_v61 = vsub.f32 1.0, %v76_v55 }
  0x11   :  { %v1229_v62 = vpack.i.bf16 %v78_v59, %v77_v58  ;;  %v246_v63 = vsub.f32 1.0, %v77_v58  ;;  %v247_v0 = vsub.f32 1.0, %v78_v59  ;;  %v45_v9 = vlaneseq }
  0x12   :  { %1195 = vperm.xlu0 %1162, %v1194_v37   ;;  %v1234_v5 = vpack.i.bf16 %v245_v61, %v244_v60  ;;  %v80_v4 = vmul.f32 0.016666668, %v1366_v1  ;;  %v81_v11 = vmul.f32 0.016666668, %v1371_v2  ;;  %v82_v18 = vmul.f32 0.016666668, %v1376_v3 }
  0x13   :  { %v1239_v6 = vpack.i.bf16 %v247_v0, %v246_v63  ;;  %v1483_v12 = vand.u32 127, %v45_v9  ;;  %v83_v19 = vmul.f32 0.016666668, %v1385_v7  ;;  %v84_v30 = vmul.f32 0.016666668, %v1391_v10 }
  0x14   :  { %1200 = vperm.xlu1 %1178, %v1199_v42   ;;  %v96_v14 = vmin.f32 %v80_v4, 1.0  ;;  %v97_v15 = vmin.f32 %v81_v11, 1.0  ;;  %v98_v20 = vmin.f32 %v82_v18, 1.0  ;;  %v85_v31 = vmul.f32 0.016666668, %v1398_v13 }
  0x15   :  { %vm79_vm0 = vcmp.eq.s32.totalorder %v1483_v12, 3  ;;  %vm130_vm1 = vcmp.eq.s32.totalorder %v1483_v12, 7  ;;  %vm131_vm2 = vcmp.eq.s32.totalorder %v1483_v12, 9  ;;  %v99_v21 = vmin.f32 %v83_v19, 1.0 }
  0x16   :  { %1205 = vperm.xlu0 %1162, %v1204_v43   ;;  %vm1490_vm3 = vmor %vm130_vm1, %vm131_vm2  ;;  %v114_v25 = vsel %vm79_vm0, %v96_v14, %v1366_v1  ;;  %v115_v26 = vsel %vm79_vm0, %v97_v15, %v1371_v2  ;;  %vm231_vm4 = vcmp.eq.s32.totalorder %v1483_v12, 8  ;;  %v116_v2 = vsel %vm79_vm0, %v98_v20, %v1376_v3  ;;  %v1248_v12 = vld [vmem:[%s1791_s3] sm:$0xff]  }
  0x17   :  { %v117_v38 = vsel %vm79_vm0, %v99_v21, %v1385_v7  ;;  %v86_v42 = vmul.f32 0.016666668, %v1405_v16  ;;  %v87_v43 = vmul.f32 0.016666668, %v1410_v17  ;;  %v100_v46 = vmin.f32 %v84_v30, 1.0 }
  0x18   :  { %1210 = vperm.xlu1 %1178, %v1209_v50   ;;  %vm369_vm5 = vcmask 130048   ;;  %v101_v3 = vmin.f32 %v85_v31, 1.0  ;;  %v88_v59 = vmul.f32 0.016666668, %v1420_v24  ;;  %v89_v0 = vmul.f32 0.016666668, %v1426_v27 }
  0x19   :  { %v103_v58 = vmin.f32 %v87_v43, 1.0  ;;  %v90_v4 = vmul.f32 0.016666668, %v1435_v33  ;;  %v91_v11 = vmul.f32 0.016666668, %v1442_v36  ;;  %vm554_vm6 = vcmask 523264  }
  0x1a   :  { %1215 = vperm.xlu0 %1162, %v1214_v53   ;;  %v119_v8 = vsel %vm79_vm0, %v101_v3, %v1398_v13  ;;  %v94_v3 = vmul.f32 0.016666668, %v1465_v48  ;;  %vm964_vm7 = vcmask 7168  }
  0x1b   :  { %v106_v31 = vmin.f32 %v90_v4, 1.0 }
  0x1c   :  { %1220 = vperm.xlu1 %1178, %v1219_v56  }
  0x1e   :  { %1225 = vperm.xlu0 %1162, %v1224_v57   ;;  %v102_v57 = vmin.f32 %v86_v42, 1.0 }
  0x20   :  { %1230 = vperm.xlu1 %1178, %v1229_v62   ;;  %v120_v13 = vsel %vm79_vm0, %v102_v57, %v1405_v16  ;;  %v92_v16 = vmul.f32 0.016666668, %v1451_v40 }
  0x22   :  { %1235 = vperm.xlu0 %1162, %v1234_v5  }
  0x24   :  { %1240 = vperm.xlu1 %1178, %v1239_v6   ;;  %v118_v6 = vsel %vm79_vm0, %v100_v46, %v1391_v10 }
  0x81   :  { %v1165_v22 = vpop.permute.xlu0 %1164 }
  0x82   :  { %v1167_v28 = vunpack.i.h.bf16 %v1165_v22  ;;  %v1166_v29 = vunpack.i.l.bf16 %v1165_v22  ;;  %v121_v22 = vsel %vm79_vm0, %v103_v58, %v1410_v17  ;;  %v108_v58 = vmin.f32 %v92_v16, 1.0 }
  0x83   :  { %v1181_v32 = vpop.permute.xlu1 %1180 }
  0x84   :  { %v215_v34 = vsel %vm1490_vm3, %v1166_v29, %v114_v25  ;;  %v216_v35 = vsel %vm1490_vm3, %v1167_v28, %v115_v26  ;;  %v1183_v1 = vunpack.i.h.bf16 %v1181_v32  ;;  %v1182_v37 = vunpack.i.l.bf16 %v1181_v32 }
  0x85   :  { %v1170_v39 = vpop.permute.xlu0 %1169  ;;  %v104_v25 = vmin.f32 %v88_v59, 1.0  ;;  %v105_v26 = vmin.f32 %v89_v0, 1.0 }
  0x86   :  { %v1172_v44 = vunpack.i.h.bf16 %v1170_v39  ;;  %v1171_v45 = vunpack.i.l.bf16 %v1170_v39  ;;  %v330_v47 = vsel %vm231_vm4, %v1182_v37, %v215_v34  ;;  %v331_v50 = vsel %vm231_vm4, %v1183_v1, %v216_v35 }
  0x87   :  { %v1186_v52 = vpop.permute.xlu1 %1185  ;;  %v346_v53 = vpack.c.bf16 %v331_v50, %v330_v47  ;;  %v107_v37 = vmin.f32 %v91_v11, 1.0  ;;  %v122_v46 = vsel %vm79_vm0, %v104_v25, %v1420_v24  ;;  %v123_v47 = vsel %vm79_vm0, %v105_v26, %v1426_v27 }
  0x88   :  { %v218_v51 = vsel %vm1490_vm3, %v1172_v44, %v117_v38  ;;  %v217_v7 = vsel %vm1490_vm3, %v1171_v45, %v116_v2  ;;  %v1188_v54 = vunpack.i.h.bf16 %v1186_v52  ;;  %v1187_v55 = vunpack.i.l.bf16 %v1186_v52 }
  0x89   :  { %v1175_v56 = vpop.permute.xlu0 %1174  ;;  %1072 = vmatprep.mubr.msk.bf16.mxu0 %vm369_vm5, %v346_v53  ;;  %v93_v44 = vmul.f32 0.016666668, %v1456_v41  ;;  %v124_v27 = vsel %vm79_vm0, %v106_v31, %v1435_v33  ;;  %v125_v57 = vsel %vm79_vm0, %v107_v37, %v1442_v36 }
  0x8a   :  { %v333_v60 = vsel %vm231_vm4, %v1188_v54, %v218_v51  ;;  %v332_v61 = vsel %vm231_vm4, %v1187_v55, %v217_v7  ;;  %v1177_v62 = vunpack.i.h.bf16 %v1175_v56  ;;  %v1176_v63 = vunpack.i.l.bf16 %v1175_v56 }
  0x8b   :  { %v347_v5 = vpack.c.bf16 %v333_v60, %v332_v61  ;;  %v1191_v9 = vpop.permute.xlu1 %1190  ;;  %v95_v51 = vmul.f32 0.016666668, %v1470_v49  ;;  %v109_v59 = vmin.f32 %v93_v44, 1.0  ;;  %v1654_v44 = vld [vmem:[%s1792_s5 + $0x18] sm:$0xff]  }
  0x8c   :  { %v1193_v15 = vunpack.i.h.bf16 %v1191_v9  ;;  %v1192_v18 = vunpack.i.l.bf16 %v1191_v9  ;;  %v220_v21 = vsel %vm1490_vm3, %v1177_v62, %v119_v8  ;;  %v219_v10 = vsel %vm1490_vm3, %v1176_v63, %v118_v6 }
  0x8d   :  { %v1196_v14 = vpop.permute.xlu0 %1195  ;;  %1073 = vmatmul.mubr.msk.bf16.vlgmr.msra.gmra.mxu0 %vm369_vm5, %v347_v5  ;;  %v110_v8 = vmin.f32 %v94_v3, 1.0  ;;  %v111_v9 = vmin.f32 %v95_v51, 1.0 }
  0x8e   :  { %v1198_v19 = vunpack.i.h.bf16 %v1196_v14  ;;  %v1197_v20 = vunpack.i.l.bf16 %v1196_v14  ;;  %v222_v17 = vsel %vm1490_vm3, %v1193_v15, %v121_v22  ;;  %v221_v2 = vsel %vm1490_vm3, %v1192_v18, %v120_v13 }
  0x8f   :  { %v1201_v30 = vpop.permute.xlu1 %1200 }
  0x90   :  { %v334_v28 = vsel %vm231_vm4, %v1197_v20, %v219_v10  ;;  %v335_v29 = vsel %vm231_vm4, %v1198_v19, %v220_v21  ;;  %v1203_v34 = vunpack.i.h.bf16 %v1201_v30  ;;  %v1202_v35 = vunpack.i.l.bf16 %v1201_v30 }
  0x91   :  { %v348_v32 = vpack.c.bf16 %v335_v29, %v334_v28  ;;  %v1206_v1 = vpop.permute.xlu0 %1205  ;;  %v126_v19 = vsel %vm79_vm0, %v108_v58, %v1451_v40  ;;  %v127_v20 = vsel %vm79_vm0, %v109_v59, %v1456_v41  ;;  %v128_v40 = vsel %vm79_vm0, %v110_v8, %v1465_v48 }
  0x92   :  { %v336_v38 = vsel %vm231_vm4, %v1202_v35, %v221_v2  ;;  %v337_v39 = vsel %vm231_vm4, %v1203_v34, %v222_v17  ;;  %v1208_v42 = vunpack.i.h.bf16 %v1206_v1  ;;  %v1207_v43 = vunpack.i.l.bf16 %v1206_v1  ;;  %v1246_v2 = vld [vmem:[%s1791_s3 + $0x10] sm:$0xff]  }
  0x93   :  { %1076 = vmatprep.mubr.msk.bf16.mxu0 %vm369_vm5, %v348_v32  ;;  %v349_v45 = vpack.c.bf16 %v337_v39, %v336_v38  ;;  %v1211_v50 = vpop.permute.xlu1 %1210  ;;  %v129_v41 = vsel %vm79_vm0, %v111_v9, %v1470_v49  ;;  %1090 = vmatprep.subr.bf16.mxu1 %v1246_v2  ;;  %v1249_v38 = vld [vmem:[%s1792_s5 + $0x38] sm:$0xff]   ;;  %v1250_v39 = vld [vmem:[%s1792_s5 + $0x30] sm:$0xff]  }
  0x94   :  { %v1213_v52 = vunpack.i.h.bf16 %v1211_v50  ;;  %v1212_v53 = vunpack.i.l.bf16 %v1211_v50  ;;  %v224_v56 = vsel %vm1490_vm3, %v1208_v42, %v123_v47  ;;  %v223_v24 = vsel %vm1490_vm3, %v1207_v43, %v122_v46  ;;  %1091 = vmatpush3.bf16.msra.mxu1 %v1246_v2  ;;  %1112 = vmatprep.subr.bf16.mxu0 %v1249_v38  ;;  %v1251_v42 = vld [vmem:[%s1792_s5 + $0x28] sm:$0xff]   ;;  %v1648_v43 = vld [vmem:[%s1792_s5 + $0x20] sm:$0xff]  }
  0x95   :  { %v1216_v7 = vpop.permute.xlu0 %1215  ;;  %1077 = vmatmul.mubr.msk.bf16.gmra.mxu0 %vm369_vm5, %v349_v45  ;;  %1092 = vmatprep.subr.bf16.mxu1 %v1247_v23  ;;  %v1662_v47 = vld [vmem:[%s1793_s2] ss:$0 sm:$0xff] }
  0x96   :  { %v1218_v54 = vunpack.i.h.bf16 %v1216_v7  ;;  %v1217_v55 = vunpack.i.l.bf16 %v1216_v7  ;;  %v226_v33 = vsel %vm1490_vm3, %v1213_v52, %v125_v57  ;;  %v225_v36 = vsel %vm1490_vm3, %v1212_v53, %v124_v27  ;;  %1113 = vmatpush3.bf16.msra.mxu0 %v1249_v38 }
  0x97   :  { %v1221_v62 = vpop.permute.xlu1 %1220  ;;  %1114 = vmatprep.subr.bf16.mxu0 %v1250_v39 }
  0x98   :  { %v338_v60 = vsel %vm231_vm4, %v1217_v55, %v223_v24  ;;  %v339_v61 = vsel %vm231_vm4, %v1218_v54, %v224_v56  ;;  %v1223_v0 = vunpack.i.h.bf16 %v1221_v62  ;;  %v1222_v5 = vunpack.i.l.bf16 %v1221_v62  ;;  %1093 = vmatpush3.bf16.msra.mxu1 %v1247_v23  ;;  %v1254_v23 = vld [vmem:[%s1792_s5 + $0x10] sm:$0xff]  }
  0x99   :  { %v350_v63 = vpack.c.bf16 %v339_v61, %v338_v60  ;;  %v1226_v6 = vpop.permute.xlu0 %1225  ;;  %1094 = vmatprep.subr.bf16.mxu1 %v1248_v12 }
  0x9a   :  { %v340_v4 = vsel %vm231_vm4, %v1222_v5, %v225_v36  ;;  %v341_v11 = vsel %vm231_vm4, %v1223_v0, %v226_v33  ;;  %v1228_v14 = vunpack.i.h.bf16 %v1226_v6  ;;  %v1227_v15 = vunpack.i.l.bf16 %v1226_v6  ;;  %1115 = vmatpush3.bf16.msra.mxu0 %v1250_v39 }
  0x9b   :  { %1080 = vmatprep.mubr.msk.bf16.mxu0 %vm369_vm5, %v350_v63  ;;  %v351_v18 = vpack.c.bf16 %v341_v11, %v340_v4  ;;  %v1231_v21 = vpop.permute.xlu1 %1230  ;;  %1116 = vmatprep.subr.bf16.mxu0 %v1251_v42 }
  0x9c   :  { %v1233_v13 = vunpack.i.h.bf16 %v1231_v21  ;;  %v1232_v22 = vunpack.i.l.bf16 %v1231_v21  ;;  %v228_v28 = vsel %vm1490_vm3, %v1228_v14, %v127_v20  ;;  %v227_v29 = vsel %vm1490_vm3, %v1227_v15, %v126_v19  ;;  %1095 = vmatpush3.bf16.msra.mxu1 %v1248_v12  ;;  %v1255_v12 = vld [vmem:[%s1792_s5 + $0x8] sm:$0xff]  }
  0x9d   :  { %v1236_v10 = vpop.permute.xlu0 %1235  ;;  %1081 = vmatmul.mubr.msk.bf16.gmra.mxu0 %vm369_vm5, %v351_v18  ;;  %1144 = vmatprep.subr.bf16.mxu1 %v1249_v38 }
  0x9e   :  { %v1238_v25 = vunpack.i.h.bf16 %v1236_v10  ;;  %v1237_v26 = vunpack.i.l.bf16 %v1236_v10  ;;  %v230_v37 = vsel %vm1490_vm3, %v1233_v13, %v129_v41  ;;  %v229_v48 = vsel %vm1490_vm3, %v1232_v22, %v128_v40  ;;  %1117 = vmatpush3.bf16.msra.mxu0 %v1251_v42 }
  0x9f   :  { %v1241_v32 = vpop.permute.xlu1 %1240  ;;  %1118 = vmatprep.subr.bf16.mxu0 %v1648_v43 }
  0xa0   :  { %v342_v30 = vsel %vm231_vm4, %v1237_v26, %v227_v29  ;;  %v343_v31 = vsel %vm231_vm4, %v1238_v25, %v228_v28  ;;  %v1243_v35 = vunpack.i.h.bf16 %v1241_v32  ;;  %v1242_v1 = vunpack.i.l.bf16 %v1241_v32 }
  0xa1   :  { %v352_v34 = vpack.c.bf16 %v343_v31, %v342_v30 }
  0xa2   :  { %v344_v16 = vsel %vm231_vm4, %v1242_v1, %v229_v48  ;;  %v345_v49 = vsel %vm231_vm4, %v1243_v35, %v230_v37  ;;  %1119 = vmatpush3.bf16.msra.mxu0 %v1648_v43 }
  0xa3   :  { %1084 = vmatprep.mubr.msk.bf16.mxu0 %vm369_vm5, %v352_v34  ;;  %v353_v17 = vpack.c.bf16 %v345_v49, %v344_v16  ;;  %1120 = vmatprep.subr.bf16.mxu0 %v1654_v44 }
  0xa5   :  { %1085 = vmatmul.mubr.msk.bf16.gmra.mxu0 %vm369_vm5, %v353_v17 }
  0xa6   :  { %1121 = vmatpush3.bf16.msra.mxu0 %v1654_v44 }
  0xa7   :  { %1122 = vmatprep.subr.bf16.mxu0 %v1254_v23 }
  0xaa   :  { %1123 = vmatpush3.bf16.msra.mxu0 %v1254_v23 }
  0xab   :  { %1124 = vmatprep.subr.bf16.mxu0 %v1255_v12 }
  0xae   :  { %1125 = vmatpush3.bf16.msra.mxu0 %v1255_v12 }
 0x14d   :  { %v1074_v45 = vpop.f32.mrf.mxu0 }
 0x14e   :  { %v437_v7 = vadd.f32 %v1074_v45, %v1662_v47 }
 0x14f   :  { %v428_v46 = vpop.f32.mrf.mxu0 }
 0x150   :  { %v429_v3 = vadd.f32 %v1662_v47, %v428_v46  ;;  %v493_v27 = vmax.f32 %v437_v7, 0.0 }
 0x151   :  { %v1075_v50 = vpop.f32.mrf.mxu0 }
 0x152   :  { %v440_v51 = vadd.f32 %v1075_v50, %v1662_v47  ;;  %v491_v56 = vmax.f32 %v429_v3, 0.0 }
 0x153   :  { %v431_v52 = vpop.f32.mrf.mxu0 }
 0x154   :  { %v432_v53 = vadd.f32 %v1662_v47, %v431_v52  ;;  %v494_v54 = vmax.f32 %v440_v51, 0.0 }
 0x155   :  { %v1078_v55 = vpop.f32.mrf.mxu0 }
 0x156   :  { %v492_v24 = vmax.f32 %v432_v53, 0.0  ;;  %v508_v59 = vpack.c.bf16 %v494_v54, %v493_v27  ;;  %v453_v63 = vadd.f32 %v1078_v55, %v1662_v47 }
 0x157   :  { %v444_v57 = vpop.f32.mrf.mxu0 }
 0x158   :  { %v507_v58 = vpack.c.bf16 %v492_v24, %v491_v56  ;;  %v445_v61 = vadd.f32 %v1662_v47, %v444_v57  ;;  %v497_v36 = vmax.f32 %v453_v63, 0.0 }
 0x159   :  { %v1079_v60 = vpop.f32.mrf.mxu0 }
 0x15a   :  { %v456_v62 = vadd.f32 %v1079_v60, %v1662_v47  ;;  %1096 = vmatprep.mubr.msk.bf16.mxu1 %vm554_vm6, %v507_v58  ;;  %v495_v9 = vmax.f32 %v445_v61, 0.0 }
 0x15b   :  { %v447_v0 = vpop.f32.mrf.mxu0  ;;  %1097 = vmatmul.mubr.msk.bf16.vlgmr.msra.gmra.mxu1 %vm554_vm6, %v508_v59 }
 0x15c   :  { %v448_v5 = vadd.f32 %v1662_v47, %v447_v0  ;;  %1152 = vmatpush3.bf16.msra.mxu1 %v1249_v38  ;;  %v498_v6 = vmax.f32 %v456_v62, 0.0  ;;  %v1256_v38 = vld [vmem:[%s1792_s5] sm:$0xff]  }
 0x15d   :  { %v1082_v8 = vpop.f32.mrf.mxu0  ;;  %1145 = vmatprep.subr.bf16.mxu1 %v1250_v39  ;;  %1126 = vmatprep.subr.bf16.mxu0 %v1256_v38 }
 0x15e   :  { %v496_v33 = vmax.f32 %v448_v5, 0.0  ;;  %v510_v14 = vpack.c.bf16 %v498_v6, %v497_v36  ;;  %v469_v20 = vadd.f32 %v1082_v8, %v1662_v47  ;;  %1127 = vmatpush3.bf16.msra.mxu0 %v1256_v38 }
 0x15f   :  { %v460_v4 = vpop.f32.mrf.mxu0 }
 0x160   :  { %v509_v11 = vpack.c.bf16 %v496_v33, %v495_v9  ;;  %1153 = vmatpush3.bf16.msra.mxu1 %v1250_v39  ;;  %v461_v18 = vadd.f32 %v1662_v47, %v460_v4  ;;  %v501_v28 = vmax.f32 %v469_v20, 0.0  ;;  %v12_v39 = vstv %s1794_s6 }
 0x161   :  { %v1083_v15 = vpop.f32.mrf.mxu0  ;;  %1146 = vmatprep.subr.bf16.mxu1 %v1251_v42  ;;  %13 = vst [vmem:[#allocation2] sm:$0x1] %v12_v39 }
 0x162   :  { %v472_v19 = vadd.f32 %v1083_v15, %v1662_v47  ;;  %1100 = vmatprep.mubr.msk.bf16.mxu1 %vm554_vm6, %v509_v11  ;;  %v499_v25 = vmax.f32 %v461_v18, 0.0 }
 0x163   :  { %v463_v21 = vpop.f32.mrf.mxu0  ;;  %1101 = vmatmul.mubr.msk.bf16.gmra.mxu1 %vm554_vm6, %v510_v14 }
 0x164   :  { %v464_v10 = vadd.f32 %v1662_v47, %v463_v21  ;;  %1154 = vmatpush3.bf16.msra.mxu1 %v1251_v42  ;;  %v502_v13 = vmax.f32 %v472_v19, 0.0 }
 0x165   :  { %v1086_v22 = vpop.f32.mrf.mxu0  ;;  %1147 = vmatprep.subr.bf16.mxu1 %v1648_v43 }
 0x166   :  { %v500_v26 = vmax.f32 %v464_v10, 0.0  ;;  %v512_v41 = vpack.c.bf16 %v502_v13, %v501_v28  ;;  %v485_v34 = vadd.f32 %v1086_v22, %v1662_v47 }
 0x167   :  { %v476_v29 = vpop.f32.mrf.mxu0 }
 0x168   :  { %v511_v40 = vpack.c.bf16 %v500_v26, %v499_v25  ;;  %1155 = vmatpush3.bf16.msra.mxu1 %v1648_v43  ;;  %v477_v31 = vadd.f32 %v1662_v47, %v476_v29  ;;  %v505_v49 = vmax.f32 %v485_v34, 0.0 }
 0x169   :  { %v1087_v30 = vpop.f32.mrf.mxu0  ;;  %1148 = vmatprep.subr.bf16.mxu1 %v1654_v44 }
 0x16a   :  { %v488_v32 = vadd.f32 %v1087_v30, %v1662_v47  ;;  %1104 = vmatprep.mubr.msk.bf16.mxu1 %vm554_vm6, %v511_v40  ;;  %v503_v48 = vmax.f32 %v477_v31, 0.0 }
 0x16b   :  { %v479_v35 = vpop.f32.mrf.mxu0  ;;  %1105 = vmatmul.mubr.msk.bf16.gmra.mxu1 %vm554_vm6, %v512_v41 }
 0x16c   :  { %v480_v1 = vadd.f32 %v1662_v47, %v479_v35  ;;  %1156 = vmatpush3.bf16.msra.mxu1 %v1654_v44  ;;  %v506_v37 = vmax.f32 %v488_v32, 0.0  ;;  %v995_v44 = vld [vmem:[%s1795_s4] ss:$0 sm:$0xff] }
 0x16d   :  { %1149 = vmatprep.subr.bf16.mxu1 %v1254_v23 }
 0x16e   :  { %v504_v16 = vmax.f32 %v480_v1, 0.0  ;;  %v514_v2 = vpack.c.bf16 %v506_v37, %v505_v49  ;;  %v1707_v49 = vld [vmem:[#allocation2] ss:$0 sm:$0xff] }
 0x170   :  { %v513_v17 = vpack.c.bf16 %v504_v16, %v503_v48  ;;  %1157 = vmatpush3.bf16.msra.mxu1 %v1254_v23 }
 0x171   :  { %1150 = vmatprep.subr.bf16.mxu1 %v1255_v12 }
 0x172   :  { %1108 = vmatprep.mubr.msk.bf16.mxu1 %vm554_vm6, %v513_v17 }
 0x173   :  { %1109 = vmatmul.mubr.msk.bf16.gmra.mxu1 %vm554_vm6, %v514_v2 }
 0x174   :  { %1158 = vmatpush3.bf16.msra.mxu1 %v1255_v12 }
 0x175   :  { %1151 = vmatprep.subr.bf16.mxu1 %v1256_v38 }
 0x178   :  { %1159 = vmatpush3.bf16.msra.mxu1 %v1256_v38 }
 0x21b   :  { %v1098_v42 = vpop.f32.mrf.mxu1 }
 0x21c   :  { %v622_v50 = vadd.f32 %v1098_v42, %v995_v44 }
 0x21d   :  { %v613_v43 = vpop.f32.mrf.mxu1 }
 0x21e   :  { %v614_v46 = vadd.f32 %v995_v44, %v613_v43  ;;  %v678_v55 = vmax.f32 %v622_v50, 0.0 }
 0x21f   :  { %v1099_v45 = vpop.f32.mrf.mxu1 }
 0x220   :  { %v625_v47 = vadd.f32 %v1099_v45, %v995_v44  ;;  %v676_v53 = vmax.f32 %v614_v46, 0.0 }
 0x221   :  { %v616_v3 = vpop.f32.mrf.mxu1 }
 0x222   :  { %v617_v51 = vadd.f32 %v995_v44, %v616_v3  ;;  %v679_v7 = vmax.f32 %v625_v47, 0.0 }
 0x223   :  { %v1102_v52 = vpop.f32.mrf.mxu1 }
 0x224   :  { %v677_v54 = vmax.f32 %v617_v51, 0.0  ;;  %v693_v27 = vpack.c.bf16 %v679_v7, %v678_v55  ;;  %v638_v60 = vadd.f32 %v1102_v52, %v995_v44 }
 0x225   :  { %v629_v56 = vpop.f32.mrf.mxu1 }
 0x226   :  { %v692_v24 = vpack.c.bf16 %v677_v54, %v676_v53  ;;  %v630_v58 = vadd.f32 %v995_v44, %v629_v56  ;;  %v682_v8 = vmax.f32 %v638_v60, 0.0 }
 0x227   :  { %v1103_v57 = vpop.f32.mrf.mxu1 }
 0x228   :  { %v641_v59 = vadd.f32 %v1103_v57, %v995_v44  ;;  %1128 = vmatprep.mubr.bf16.mxu0 %v692_v24  ;;  %v680_v5 = vmax.f32 %v630_v58, 0.0 }
 0x229   :  { %v632_v61 = vpop.f32.mrf.mxu1  ;;  %1129 = vmatmul.mubr.bf16.vlgmr.msra.gmra.mxu0 %v693_v27 }
 0x22a   :  { %v633_v62 = vadd.f32 %v995_v44, %v632_v61  ;;  %v683_v63 = vmax.f32 %v641_v59, 0.0 }
 0x22b   :  { %v1106_v0 = vpop.f32.mrf.mxu1 }
 0x22c   :  { %v681_v6 = vmax.f32 %v633_v62, 0.0  ;;  %v695_v36 = vpack.c.bf16 %v683_v63, %v682_v8  ;;  %v654_v15 = vadd.f32 %v1106_v0, %v995_v44 }
 0x22d   :  { %v645_v9 = vpop.f32.mrf.mxu1 }
 0x22e   :  { %v694_v33 = vpack.c.bf16 %v681_v6, %v680_v5  ;;  %v646_v11 = vadd.f32 %v995_v44, %v645_v9  ;;  %v686_v22 = vmax.f32 %v654_v15, 0.0 }
 0x22f   :  { %v1107_v4 = vpop.f32.mrf.mxu1 }
 0x230   :  { %v657_v14 = vadd.f32 %v1107_v4, %v995_v44  ;;  %1132 = vmatprep.mubr.bf16.mxu0 %v694_v33  ;;  %v684_v10 = vmax.f32 %v646_v11, 0.0 }
 0x231   :  { %v648_v18 = vpop.f32.mrf.mxu1  ;;  %1133 = vmatmul.mubr.bf16.gmra.mxu0 %v695_v36 }
 0x232   :  { %v649_v19 = vadd.f32 %v995_v44, %v648_v18  ;;  %v687_v20 = vmax.f32 %v657_v14, 0.0 }
 0x233   :  { %v1110_v21 = vpop.f32.mrf.mxu1 }
 0x234   :  { %v685_v13 = vmax.f32 %v649_v19, 0.0  ;;  %v697_v28 = vpack.c.bf16 %v687_v20, %v686_v22  ;;  %v670_v30 = vadd.f32 %v1110_v21, %v995_v44 }
 0x235   :  { %v661_v25 = vpop.f32.mrf.mxu1 }
 0x236   :  { %v696_v26 = vpack.c.bf16 %v685_v13, %v684_v10  ;;  %v662_v40 = vadd.f32 %v995_v44, %v661_v25  ;;  %v690_v37 = vmax.f32 %v670_v30, 0.0 }
 0x237   :  { %v1111_v29 = vpop.f32.mrf.mxu1 }
 0x238   :  { %v673_v41 = vadd.f32 %v1111_v29, %v995_v44  ;;  %1136 = vmatprep.mubr.bf16.mxu0 %v696_v26  ;;  %v688_v35 = vmax.f32 %v662_v40, 0.0 }
 0x239   :  { %v664_v31 = vpop.f32.mrf.mxu1  ;;  %1137 = vmatmul.mubr.bf16.gmra.mxu0 %v697_v28 }
 0x23a   :  { %v665_v32 = vadd.f32 %v995_v44, %v664_v31  ;;  %v691_v34 = vmax.f32 %v673_v41, 0.0 }
 0x23c   :  { %v689_v1 = vmax.f32 %v665_v32, 0.0  ;;  %v699_v16 = vpack.c.bf16 %v691_v34, %v690_v37 }
 0x23e   :  { %v698_v48 = vpack.c.bf16 %v689_v1, %v688_v35 }
 0x240   :  { %1140 = vmatprep.mubr.bf16.mxu1 %v698_v48 }
 0x241   :  { %1141 = vmatmul.mubr.bf16.vlgmr.msra.gmra.mxu1 %v699_v16 }
 0x2e9   :  { %v1130_v17 = vpop.f32.mrf.mxu0 }
 0x2ea   :  { %v814_v2 = vadd.f32 %v1130_v17, %v1707_v49 }
 0x2eb   :  { %v805_v23 = vpop.f32.mrf.mxu0 }
 0x2ec   :  { %v1019_v12 = vmul.f32 -1.442695, %v814_v2  ;;  %v806_v38 = vadd.f32 %v1707_v49, %v805_v23 }
 0x2ed   :  { %v1131_v39 = vpop.f32.mrf.mxu0 }
 0x2ee   :  { %1257 = vpow2.f32 %v1019_v12  ;;  %v1017_v42 = vmul.f32 -1.442695, %v806_v38  ;;  %v817_v43 = vadd.f32 %v1131_v39, %v1707_v49 }
 0x2ef   :  { %v808_v44 = vpop.f32.mrf.mxu0 }
 0x2f0   :  { %1259 = vpow2.f32 %v1017_v42  ;;  %v1020_v45 = vmul.f32 -1.442695, %v817_v43  ;;  %v809_v46 = vadd.f32 %v1707_v49, %v808_v44 }
 0x2f1   :  { %v1134_v47 = vpop.f32.mrf.mxu0 }
 0x2f2   :  { %1261 = vpow2.f32 %v1020_v45  ;;  %v1018_v50 = vmul.f32 -1.442695, %v809_v46  ;;  %v830_v3 = vadd.f32 %v1134_v47, %v1707_v49 }
 0x2f3   :  { %v821_v51 = vpop.f32.mrf.mxu0 }
 0x2f4   :  { %1263 = vpow2.f32 %v1018_v50  ;;  %v1023_v7 = vmul.f32 -1.442695, %v830_v3  ;;  %v822_v52 = vadd.f32 %v1707_v49, %v821_v51 }
 0x2f5   :  { %v1135_v53 = vpop.f32.mrf.mxu0 }
 0x2f6   :  { %1265 = vpow2.f32 %v1023_v7  ;;  %v1021_v54 = vmul.f32 -1.442695, %v822_v52  ;;  %v833_v55 = vadd.f32 %v1135_v53, %v1707_v49 }
 0x2f7   :  { %v824_v56 = vpop.f32.mrf.mxu0 }
 0x2f8   :  { %1267 = vpow2.f32 %v1021_v54  ;;  %v1024_v24 = vmul.f32 -1.442695, %v833_v55  ;;  %v825_v27 = vadd.f32 %v1707_v49, %v824_v56 }
 0x2f9   :  { %v1138_v57 = vpop.f32.mrf.mxu0 }
 0x2fa   :  { %1269 = vpow2.f32 %v1024_v24  ;;  %v1022_v58 = vmul.f32 -1.442695, %v825_v27  ;;  %v846_v59 = vadd.f32 %v1138_v57, %v1707_v49 }
 0x2fb   :  { %v1258_v60 = vpop.eup %1257  ;;  %v837_v61 = vpop.f32.mrf.mxu0 }
 0x2fc   :  { %v918_v62 = vadd.f32 1.0, %v1258_v60  ;;  %1271 = vpow2.f32 %v1022_v58  ;;  %v1027_v63 = vmul.f32 -1.442695, %v846_v59  ;;  %v838_v0 = vadd.f32 %v1707_v49, %v837_v61 }
 0x2fd   :  { %v1260_v5 = vpop.eup %1259  ;;  %v1139_v6 = vpop.f32.mrf.mxu0 }
 0x2fe   :  { %1273 = vrcp.f32 %v918_v62  ;;  %v916_v8 = vadd.f32 1.0, %v1260_v5  ;;  %v1025_v9 = vmul.f32 -1.442695, %v838_v0  ;;  %v849_v33 = vadd.f32 %v1139_v6, %v1707_v49 }
 0x2ff   :  { %v1262_v36 = vpop.eup %1261  ;;  %1275 = vpow2.f32 %v1027_v63  ;;  %v840_v4 = vpop.f32.mrf.mxu0 }
 0x300   :  { %1277 = vrcp.f32 %v916_v8  ;;  %v919_v11 = vadd.f32 1.0, %v1262_v36  ;;  %v1028_v14 = vmul.f32 -1.442695, %v849_v33  ;;  %v841_v15 = vadd.f32 %v1707_v49, %v840_v4 }
 0x301   :  { %v1264_v18 = vpop.eup %1263  ;;  %1279 = vpow2.f32 %v1025_v9  ;;  %v1142_v19 = vpop.f32.mrf.mxu1 }
 0x302   :  { %1281 = vrcp.f32 %v919_v11  ;;  %v917_v20 = vadd.f32 1.0, %v1264_v18  ;;  %v1026_v21 = vmul.f32 -1.442695, %v841_v15  ;;  %v862_v10 = vadd.f32 %v1142_v19, %v1707_v49 }
 0x303   :  { %v1266_v13 = vpop.eup %1265  ;;  %1283 = vpow2.f32 %v1028_v14  ;;  %v853_v22 = vpop.f32.mrf.mxu1 }
 0x304   :  { %1285 = vrcp.f32 %v917_v20  ;;  %v922_v25 = vadd.f32 1.0, %v1266_v13  ;;  %v1031_v26 = vmul.f32 -1.442695, %v862_v10  ;;  %v854_v28 = vadd.f32 %v1707_v49, %v853_v22 }
 0x305   :  { %v1268_v29 = vpop.eup %1267  ;;  %1287 = vpow2.f32 %v1026_v21  ;;  %v1143_v40 = vpop.f32.mrf.mxu1 }
 0x306   :  { %1289 = vrcp.f32 %v922_v25  ;;  %v920_v41 = vadd.f32 1.0, %v1268_v29  ;;  %v1029_v30 = vmul.f32 -1.442695, %v854_v28  ;;  %v865_v31 = vadd.f32 %v1143_v40, %v1707_v49 }
 0x307   :  { %v1270_v32 = vpop.eup %1269  ;;  %1291 = vpow2.f32 %v1031_v26  ;;  %v856_v34 = vpop.f32.mrf.mxu1 }
 0x308   :  { %1293 = vrcp.f32 %v920_v41  ;;  %v923_v35 = vadd.f32 1.0, %v1270_v32  ;;  %v1032_v1 = vmul.f32 -1.442695, %v865_v31  ;;  %v857_v37 = vadd.f32 %v1707_v49, %v856_v34 }
 0x309   :  { %v1272_v48 = vpop.eup %1271  ;;  %1295 = vpow2.f32 %v1029_v30 }
 0x30a   :  { %1297 = vrcp.f32 %v923_v35  ;;  %v921_v16 = vadd.f32 1.0, %v1272_v48  ;;  %v1030_v17 = vmul.f32 -1.442695, %v857_v37 }
 0x30b   :  { %v1274_v2 = vpop.eup %1273  ;;  %1299 = vpow2.f32 %v1032_v1 }
 0x30c   :  { %v1276_v23 = vpop.eup %1275  ;;  %967 = vst.msk [vmem:[%s1796_s7 + $0x10] sm:$0xff] %vm964_vm7, %v1274_v2  ;;  %1301 = vrcp.f32 %v921_v16 }
 0x30d   :  { %v1278_v12 = vpop.eup %1277  ;;  %v926_v38 = vadd.f32 1.0, %v1276_v23  ;;  %1303 = vpow2.f32 %v1030_v17 }
 0x30e   :  { %v1280_v39 = vpop.eup %1279  ;;  %965 = vst.msk [vmem:[%s1796_s7] sm:$0xff] %vm964_vm7, %v1278_v12 }
 0x30f   :  { %v1282_v49 = vpop.eup %1281  ;;  %1305 = vrcp.f32 %v926_v38  ;;  %v924_v42 = vadd.f32 1.0, %v1280_v39 }
 0x310   :  { %v1284_v43 = vpop.eup %1283  ;;  %968 = vst.msk [vmem:[%s1796_s7 + $0x18] sm:$0xff] %vm964_vm7, %v1282_v49 }
 0x311   :  { %v1286_v44 = vpop.eup %1285  ;;  %1307 = vrcp.f32 %v924_v42  ;;  %v927_v45 = vadd.f32 1.0, %v1284_v43 }
 0x312   :  { %v1288_v46 = vpop.eup %1287  ;;  %966 = vst.msk [vmem:[%s1796_s7 + $0x8] sm:$0xff] %vm964_vm7, %v1286_v44 }
 0x313   :  { %v1290_v47 = vpop.eup %1289  ;;  %1309 = vrcp.f32 %v927_v45  ;;  %v925_v50 = vadd.f32 1.0, %v1288_v46 }
 0x314   :  { %v1292_v3 = vpop.eup %1291  ;;  %971 = vst.msk [vmem:[%s1796_s7 + $0x30] sm:$0xff] %vm964_vm7, %v1290_v47 }
 0x315   :  { %v1294_v51 = vpop.eup %1293  ;;  %1311 = vrcp.f32 %v925_v50  ;;  %v930_v7 = vadd.f32 1.0, %v1292_v3 }
 0x316   :  { %v1296_v52 = vpop.eup %1295  ;;  %969 = vst.msk [vmem:[%s1796_s7 + $0x20] sm:$0xff] %vm964_vm7, %v1294_v51 }
 0x317   :  { %v1298_v53 = vpop.eup %1297  ;;  %1313 = vrcp.f32 %v930_v7  ;;  %v928_v54 = vadd.f32 1.0, %v1296_v52 }
 0x318   :  { %v1300_v55 = vpop.eup %1299  ;;  %972 = vst.msk [vmem:[%s1796_s7 + $0x38] sm:$0xff] %vm964_vm7, %v1298_v53 }
 0x319   :  { %v1302_v56 = vpop.eup %1301  ;;  %1315 = vrcp.f32 %v928_v54  ;;  %v931_v24 = vadd.f32 1.0, %v1300_v55 }
 0x31a   :  { %v1304_v27 = vpop.eup %1303  ;;  %970 = vst.msk [vmem:[%s1796_s7 + $0x28] sm:$0xff] %vm964_vm7, %v1302_v56 }
 0x31b   :  { %1317 = vrcp.f32 %v931_v24  ;;  %v929_v57 = vadd.f32 1.0, %v1304_v27 }
 0x31c   :  { %v1306_v58 = vpop.eup %1305 }
 0x31d   :  { %975 = vst.msk [vmem:[%s1796_s7 + $0x50] sm:$0xff] %vm964_vm7, %v1306_v58  ;;  %1319 = vrcp.f32 %v929_v57 }
 0x31e   :  { %v1308_v59 = vpop.eup %1307 }
 0x31f   :  { %973 = vst.msk [vmem:[%s1796_s7 + $0x40] sm:$0xff] %vm964_vm7, %v1308_v59 }
 0x320   :  { %v1310_v60 = vpop.eup %1309 }
 0x321   :  { %976 = vst.msk [vmem:[%s1796_s7 + $0x58] sm:$0xff] %vm964_vm7, %v1310_v60 }
 0x322   :  { %v1312_v61 = vpop.eup %1311 }
 0x323   :  { %974 = vst.msk [vmem:[%s1796_s7 + $0x48] sm:$0xff] %vm964_vm7, %v1312_v61 }
 0x324   :  { %v1314_v62 = vpop.eup %1313 }
 0x325   :  { %979 = vst.msk [vmem:[%s1796_s7 + $0x70] sm:$0xff] %vm964_vm7, %v1314_v62 }
 0x326   :  { %v1316_v63 = vpop.eup %1315 }
 0x327   :  { %977 = vst.msk [vmem:[%s1796_s7 + $0x60] sm:$0xff] %vm964_vm7, %v1316_v63 }
 0x328   :  { %v1318_v0 = vpop.eup %1317 }
 0x329   :  { %980 = vst.msk [vmem:[%s1796_s7 + $0x78] sm:$0xff] %vm964_vm7, %v1318_v0 }
 0x32a   :  { %v1320_v5 = vpop.eup %1319 }
 0x32b   :  { %978 = vst.msk [vmem:[%s1796_s7 + $0x68] sm:$0xff] %vm964_vm7, %v1320_v5 }

</bundles_post_ra>
